<compile_context>
chip_gen: v5e
topology: v5e:2x2
jax: 0.10.0
libtpu: 0.0.40
codegen_flags: <defaults>
</compile_context>

<pallas_src>
import functools

import numpy as np
import jax
import jax.numpy as jnp
from jax.experimental import pallas as pl
from jax.experimental.pallas import tpu as pltpu


def _npair_loss_kernel(anc_ref, pos_ref, ce_ref, m_sc, l_sc, diag_sc, *,
                       num_pairs, tq, tk, mask_cols, mask_rows):
    i = pl.program_id(0)              # anchor row block   (parallel)
    j = pl.program_id(1)              # positive col block (arbitrary / reduction)
    last_j = pl.num_programs(1) - 1

    @pl.when(j == 0)
    def _init():
        m_sc[...] = jnp.full_like(m_sc, -jnp.inf)
        l_sc[...] = jnp.zeros_like(l_sc)
        diag_sc[...] = jnp.zeros_like(diag_sc)

    a = anc_ref[...]                  # (tq, D) native dtype
    p = pos_ref[...]                  # (tk, D) native dtype

    # (tq, tk) similarity block on the MXU: contract the last dim of both
    # operands (no transpose of the positives tile), accumulate in f32.
    sim = jax.lax.dot_general(
        a, p,
        dimension_numbers=(((1,), (1,)), ((), ())),
        preferred_element_type=jnp.float32)

    def online_lse_update(s):
        m_prev = m_sc[...]
        m_new = jnp.maximum(m_prev, jnp.max(s, axis=1, keepdims=True))
        l_sc[...] = (jnp.exp(m_prev - m_new) * l_sc[...]
                     + jnp.sum(jnp.exp(s - m_new), axis=1, keepdims=True))
        m_sc[...] = m_new

    if mask_cols:
        # Only the last column block contains padded columns: gate the
        # iota/compare/select there; interior blocks skip the VPU mask work.
        @pl.when(j == last_j)
        def _masked_update():
            col = jax.lax.broadcasted_iota(jnp.int32, sim.shape, 1) + j * tk
            online_lse_update(jnp.where(col < num_pairs, sim, -jnp.inf))

        @pl.when(j != last_j)
        def _unmasked_update():
            online_lse_update(sim)
    else:
        online_lse_update(sim)

    # Diagonal term <anchor_r, positive_r> lives only in block j == i
    # (requires tq == tk): cheap f32 VPU multiply-reduce.
    @pl.when(j == i)
    def _diag():
        diag_sc[...] = jnp.sum(
            a.astype(jnp.float32) * p.astype(jnp.float32),
            axis=1, keepdims=True)

    # Epilogue: finalize CE for this row block; zero padded anchor rows so the
    # wrapper's sum / num_pairs is the exact mean.
    @pl.when(j == last_j)
    def _epilogue():
        ce = (m_sc[...] + jnp.log(l_sc[...])) - diag_sc[...]
        if mask_rows:
            row = jax.lax.broadcasted_iota(jnp.int32, ce.shape, 0) + i * tq
            ce = jnp.where(row < num_pairs, ce, 0.0)
        ce_ref[...] = ce


def _select_pairs(labels_np):
    """Replicates lmu.convert_to_pos_pairs_with_unique_labels(None, labels)."""
    labels_np = np.asarray(labels_np)
    matches = labels_np[:, None] == labels_np[None, :]
    np.fill_diagonal(matches, False)
    a, p = np.where(matches)                      # row-major, like torch.where
    _, unique_idx = np.unique(labels_np[a], return_index=True)
    return a[unique_idx], p[unique_idx]


def _pick_tile(num_pairs, tile):
    """Tile size matching MXU width while keeping >= 2 row blocks for megacore."""
    tile = max(8, (int(tile) // 8) * 8)
    if num_pairs <= 128:
        # One sublane-padded block covers everything.
        return max(8, 8 * (-(-num_pairs // 8)))
    # Keep at least two row blocks so the "parallel" grid axis can shard
    # across both v7x TensorCores (256 matches the v6e/v7x MXU, 128 the v5e).
    while tile > 128 and -(-num_pairs // tile) < 2:
        tile = max(128, ((tile // 2) // 8) * 8)
    return tile


def npair_loss(embeddings, labels_np, l2_reg=0, tile=256, positives_buffers=3,
               feed_dtype=None, vmem_limit_bytes=None):
    """embeddings: jnp.ndarray [N, D]; labels_np: host numpy int array [N].

    feed_dtype: optional dtype (e.g. jnp.bfloat16) to feed the MXU with; keeps
    f32 accumulation but slightly changes similarity values (accuracy
    tradeoff). Default None preserves exact module semantics.
    """
    if l2_reg != 0:
        # TODO(synk): add l2_reg_weight * embedding-norm regularizer term.
        raise NotImplementedError("only l2_reg=0 (the module default) is implemented")

    anchor_idx, positive_idx = _select_pairs(labels_np)
    num_pairs = int(anchor_idx.shape[0])
    if num_pairs == 0:
        return jnp.float32(0.0)

    N, D = embeddings.shape
    if feed_dtype is not None:
        embeddings = embeddings.astype(feed_dtype)

    tq = tk = _pick_tile(num_pairs, tile)
    assert tq == tk, "the on-diagonal diag trick requires square tiles"
    p_pad = tq * (-(-num_pairs // tq))
    has_pad = p_pad != num_pairs

    # Fused gather + row padding: out-of-range index N -> zero-filled row
    # (keeps padded anchor rows' lse finite; padded positive columns are -inf
    # masked in-kernel).  No jnp.pad HBM passes, D stays un-padded.
    # TODO(synk): fuse this gather into the kernel via PrefetchScalarGridSpec
    # scalar-prefetched indices + per-row DMA from raw embeddings in HBM.
    idx_a = np.full((p_pad,), N, dtype=np.int32)
    idx_a[:num_pairs] = anchor_idx
    idx_p = np.full((p_pad,), N, dtype=np.int32)
    idx_p[:num_pairs] = positive_idx
    anchors = jnp.take(embeddings, jnp.asarray(idx_a), axis=0,
                       mode="fill", fill_value=0)        # (p_pad, D)
    positives = jnp.take(embeddings, jnp.asarray(idx_p), axis=0,
                         mode="fill", fill_value=0)      # (p_pad, D)

    grid = (p_pad // tq, p_pad // tk)
    n_row, n_col = grid
    itemsize = jnp.dtype(anchors.dtype).itemsize

    # Deeper positives pipeline only when the column stream is long enough.
    pos_bufs = max(2, min(int(positives_buffers), n_col))
    if pos_bufs > 2:
        pos_spec = pl.BlockSpec((tk, D), lambda i, j: (j, 0),
                                pipeline_mode=pl.Buffered(pos_bufs))
    else:
        pos_spec = pl.BlockSpec((tk, D), lambda i, j: (j, 0))

    # VMEM budget: D is untiled, so input buffers dominate.
    if vmem_limit_bytes is None:
        needed = ((2 * tq + pos_bufs * tk) * D * itemsize
                  + 8 * tq * 4 + 4 * p_pad)
        vmem_limit_bytes = int(min(64 << 20, max(32 << 20, 2 * needed)))

    kernel = functools.partial(_npair_loss_kernel,
                               num_pairs=num_pairs, tq=tq, tk=tk,
                               mask_cols=has_pad, mask_rows=has_pad)

    ce = pl.pallas_call(
        kernel,
        out_shape=jax.ShapeDtypeStruct((p_pad, 1), jnp.float32),
        grid_spec=pltpu.PrefetchScalarGridSpec(
            num_scalar_prefetch=0,
            grid=grid,
            in_specs=[
                pl.BlockSpec((tq, D), lambda i, j: (i, 0)),   # anchors
                pos_spec,                                     # positives (streamed)
            ],
            out_specs=pl.BlockSpec((tq, 1), lambda i, j: (i, 0)),
            scratch_shapes=[
                pltpu.VMEM((tq, 1), jnp.float32),   # running max  m
                pltpu.VMEM((tq, 1), jnp.float32),   # running sum  l
                pltpu.VMEM((tq, 1), jnp.float32),   # diagonal terms
            ],
        ),
        compiler_params=pltpu.CompilerParams(
            dimension_semantics=("parallel", "arbitrary"),
            vmem_limit_bytes=vmem_limit_bytes),
        cost_estimate=pl.CostEstimate(
            flops=2 * p_pad * p_pad * D,
            transcendentals=p_pad * p_pad,
            # anchors read once + positives re-streamed per row block + output
            bytes_accessed=(1 + n_row) * p_pad * D * itemsize + p_pad * 4),
    )(anchors, positives)

    # Padded rows are zeroed in-kernel, so this is the exact mean over pairs.
    return jnp.sum(ce) / jnp.float32(num_pairs)


def _reference_loss(embeddings, labels_np):
    a_idx, p_idx = _select_pairs(labels_np)
    anc = np.asarray(embeddings)[a_idx].astype(np.float32)
    pos = np.asarray(embeddings)[p_idx].astype(np.float32)
    sim = anc @ pos.T
    m = sim.max(axis=1, keepdims=True)
    lse = (m + np.log(np.exp(sim - m).sum(axis=1, keepdims=True))).squeeze(1)
    return float((lse - np.diag(sim)).mean())


if __name__ == "__main__":
    key = jax.random.PRNGKey(0)
    k1, k2, k3 = jax.random.split(key, 3)

    # Small case (module-typical shapes): 4 classes x 2 samples, D = 32.
    # Exercises the single-block (no masking) path.
    emb_small = jax.random.normal(k1, (8, 32), dtype=jnp.float32)
    labels_small = np.array([0, 0, 1, 1, 2, 2, 3, 3], dtype=np.int32)
    loss_small = jax.block_until_ready(npair_loss(emb_small, labels_small))
    ref_small = _reference_loss(emb_small, labels_small)
    assert np.allclose(np.asarray(loss_small), ref_small, rtol=1e-4, atol=1e-4), \
        (float(loss_small), ref_small)

    # 130 pairs -> tile selection drops 256 -> 128 (keeps 2 row blocks),
    # 2x2 grid of 128x128 tiles with row/column padding masks.
    n_classes, d = 130, 64
    labels_mid = np.repeat(np.arange(n_classes, dtype=np.int32), 2)
    emb_mid = jax.random.normal(k2, (labels_mid.shape[0], d), dtype=jnp.float32)
    loss_mid = jax.block_until_ready(npair_loss(emb_mid, labels_mid))
    ref_mid = _reference_loss(emb_mid, labels_mid)
    assert np.allclose(np.asarray(loss_mid), ref_mid, rtol=1e-3, atol=1e-3), \
        (float(loss_mid), ref_mid)

    # 300 pairs at tile=128 -> 3x3 grid: exercises the multi-column streaming
    # logsumexp with the deeper (Buffered(3)) positives pipeline and masks.
    n_classes, d = 300, 64
    labels_big = np.repeat(np.arange(n_classes, dtype=np.int32), 2)
    emb_big = jax.random.normal(k3, (labels_big.shape[0], d), dtype=jnp.float32)
    loss_big = jax.block_until_ready(npair_loss(emb_big, labels_big, tile=128))
    ref_big = _reference_loss(emb_big, labels_big)
    assert np.allclose(np.asarray(loss_big), ref_big, rtol=1e-3, atol=1e-3), \
        (float(loss_big), ref_big)

    print("KERNEL_OK")
</pallas_src>

<mosaic_0001>
module attributes {stable_mosaic.version = 11 : i64} {
  func.func @_npair_loss_kernel(%arg0: i32, %arg1: i32, %arg2: memref<8x32xf32, #tpu.memory_space<vmem>>, %arg3: memref<8x32xf32, #tpu.memory_space<vmem>>, %arg4: memref<8x1xf32, #tpu.memory_space<vmem>>, %arg5: memref<8x1xf32, #tpu.memory_space<vmem>>, %arg6: memref<8x1xf32, #tpu.memory_space<vmem>>, %arg7: memref<8x1xf32, #tpu.memory_space<vmem>>) attributes {dimension_semantics = [#tpu.dimension_semantics<parallel>, #tpu.dimension_semantics<arbitrary>], iteration_bounds = array<i64: 1, 1>, scalar_prefetch = 0 : i64, scratch_operands = 3 : i64, tpu.core_type = #tpu.core_type<tc>, window_params = [{transform_indices = @transform_0, window_bounds = array<i64: 8, 32>}, {transform_indices = @transform_1, window_bounds = array<i64: 8, 32>}, {transform_indices = @transform_2, window_bounds = array<i64: 8, 1>}]} {
    %c0_i32 = arith.constant 0 : i32
    %0 = arith.cmpi eq, %arg1, %c0_i32 : i32
    %1 = arith.extui %0 : i1 to i32
    %c0_i32_0 = arith.constant 0 : i32
    %2 = arith.cmpi ne, %1, %c0_i32_0 : i32
    scf.if %2 {
      %cst_11 = arith.constant 0xFF800000 : f32
      %18 = vector.broadcast %cst_11 : f32 to vector<8x1xf32>
      %c0_12 = arith.constant 0 : index
      %c0_13 = arith.constant 0 : index
      %19 = vector.load %arg5[%c0_12, %c0_13] : memref<8x1xf32, #tpu.memory_space<vmem>>, vector<8x1xf32>
      tpu.vector_store %arg5[%c0_12, %c0_13], %18 {strides = array<i32>} : memref<8x1xf32, #tpu.memory_space<vmem>>, vector<8x1xf32>,
      %cst_14 = arith.constant 0.000000e+00 : f32
      %20 = vector.broadcast %cst_14 : f32 to vector<8x1xf32>
      %c0_15 = arith.constant 0 : index
      %c0_16 = arith.constant 0 : index
      %21 = vector.load %arg6[%c0_15, %c0_16] : memref<8x1xf32, #tpu.memory_space<vmem>>, vector<8x1xf32>
      tpu.vector_store %arg6[%c0_15, %c0_16], %20 {strides = array<i32>} : memref<8x1xf32, #tpu.memory_space<vmem>>, vector<8x1xf32>,
      %cst_17 = arith.constant 0.000000e+00 : f32
      %22 = vector.broadcast %cst_17 : f32 to vector<8x1xf32>
      %c0_18 = arith.constant 0 : index
      %c0_19 = arith.constant 0 : index
      %23 = vector.load %arg7[%c0_18, %c0_19] : memref<8x1xf32, #tpu.memory_space<vmem>>, vector<8x1xf32>
      tpu.vector_store %arg7[%c0_18, %c0_19], %22 {strides = array<i32>} : memref<8x1xf32, #tpu.memory_space<vmem>>, vector<8x1xf32>,
    } else {
    }
    %c0 = arith.constant 0 : index
    %c0_1 = arith.constant 0 : index
    %3 = vector.load %arg2[%c0, %c0_1] : memref<8x32xf32, #tpu.memory_space<vmem>>, vector<8x32xf32>
    %c0_2 = arith.constant 0 : index
    %c0_3 = arith.constant 0 : index
    %4 = vector.load %arg3[%c0_2, %c0_3] : memref<8x32xf32, #tpu.memory_space<vmem>>, vector<8x32xf32>
    %cst = arith.constant dense<0.000000e+00> : vector<8x8xf32>
    %5 = tpu.matmul %3, %4, %cst {dimension_numbers = #tpu.dot_dimension_numbers<[1], [1], [0], [0], [0, 0, 1, 0], [], []>} : vector<8x32xf32>, vector<8x32xf32>, vector<8x8xf32> -> vector<8x8xf32>
    %c0_i32_4 = arith.constant 0 : i32
    %6 = arith.cmpi eq, %arg1, %c0_i32_4 : i32
    %7 = arith.extui %6 : i1 to i32
    %c0_i32_5 = arith.constant 0 : i32
    %8 = arith.cmpi ne, %7, %c0_i32_5 : i32
    scf.if %8 {
      %18 = tpu.iota {dimensions = array<i32: 1>} : vector<8x8xi32>
      %c8_i32 = arith.constant 8 : i32
      %19 = arith.muli %arg1, %c8_i32 : i32
      %20 = vector.broadcast %19 : i32 to vector<8x8xi32>
      %21 = arith.addi %18, %20 : vector<8x8xi32>
      %c4_i32 = arith.constant 4 : i32
      %22 = vector.broadcast %c4_i32 : i32 to vector<8x8xi32>
      %23 = arith.cmpi slt, %21, %22 : vector<8x8xi32>
      %cst_11 = arith.constant 0xFF800000 : f32
      %24 = vector.broadcast %cst_11 : f32 to vector<8x8xf32>
      %25 = arith.select %23, %5, %24 : vector<8x8xi1>, vector<8x8xf32>
      %c0_12 = arith.constant 0 : index
      %c0_13 = arith.constant 0 : index
      %26 = vector.load %arg5[%c0_12, %c0_13] : memref<8x1xf32, #tpu.memory_space<vmem>>, vector<8x1xf32>
      %cst_14 = arith.constant dense<0xFF800000> : vector<8xf32>
      %27 = vector.multi_reduction <maximumf>, %25, %cst_14 [1] : vector<8x8xf32> to vector<8xf32>
      %28 = vector.shape_cast %27 : vector<8xf32> to vector<8x1xf32>
      %29 = arith.maximumf %26, %28 : vector<8x1xf32>
      %30 = arith.subf %26, %29 : vector<8x1xf32>
      %31 = math.exp %30 : vector<8x1xf32>
      %c0_15 = arith.constant 0 : index
      %c0_16 = arith.constant 0 : index
      %32 = vector.load %arg6[%c0_15, %c0_16] : memref<8x1xf32, #tpu.memory_space<vmem>>, vector<8x1xf32>
      %33 = arith.mulf %31, %32 : vector<8x1xf32>
      %34 = vector.broadcast %29 : vector<8x1xf32> to vector<8x8xf32>
      %35 = arith.subf %25, %34 : vector<8x8xf32>
      %36 = math.exp %35 : vector<8x8xf32>
      %cst_17 = arith.constant dense<0.000000e+00> : vector<8xf32>
      %37 = vector.multi_reduction <add>, %36, %cst_17 [1] : vector<8x8xf32> to vector<8xf32>
      %38 = vector.shape_cast %37 : vector<8xf32> to vector<8x1xf32>
      %39 = arith.addf %33, %38 : vector<8x1xf32>
      %c0_18 = arith.constant 0 : index
      %c0_19 = arith.constant 0 : index
      %40 = vector.load %arg6[%c0_18, %c0_19] : memref<8x1xf32, #tpu.memory_space<vmem>>, vector<8x1xf32>
      tpu.vector_store %arg6[%c0_18, %c0_19], %39 {strides = array<i32>} : memref<8x1xf32, #tpu.memory_space<vmem>>, vector<8x1xf32>,
      %c0_20 = arith.constant 0 : index
      %c0_21 = arith.constant 0 : index
      %41 = vector.load %arg5[%c0_20, %c0_21] : memref<8x1xf32, #tpu.memory_space<vmem>>, vector<8x1xf32>
      tpu.vector_store %arg5[%c0_20, %c0_21], %29 {strides = array<i32>} : memref<8x1xf32, #tpu.memory_space<vmem>>, vector<8x1xf32>,
    } else {
    }
    %c0_i32_6 = arith.constant 0 : i32
    %9 = arith.cmpi ne, %arg1, %c0_i32_6 : i32
    %10 = arith.extui %9 : i1 to i32
    %c0_i32_7 = arith.constant 0 : i32
    %11 = arith.cmpi ne, %10, %c0_i32_7 : i32
    scf.if %11 {
      %c0_11 = arith.constant 0 : index
      %c0_12 = arith.constant 0 : index
      %18 = vector.load %arg5[%c0_11, %c0_12] : memref<8x1xf32, #tpu.memory_space<vmem>>, vector<8x1xf32>
      %cst_13 = arith.constant dense<0xFF800000> : vector<8xf32>
      %19 = vector.multi_reduction <maximumf>, %5, %cst_13 [1] : vector<8x8xf32> to vector<8xf32>
      %20 = vector.shape_cast %19 : vector<8xf32> to vector<8x1xf32>
      %21 = arith.maximumf %18, %20 : vector<8x1xf32>
      %22 = arith.subf %18, %21 : vector<8x1xf32>
      %23 = math.exp %22 : vector<8x1xf32>
      %c0_14 = arith.constant 0 : index
      %c0_15 = arith.constant 0 : index
      %24 = vector.load %arg6[%c0_14, %c0_15] : memref<8x1xf32, #tpu.memory_space<vmem>>, vector<8x1xf32>
      %25 = arith.mulf %23, %24 : vector<8x1xf32>
      %26 = vector.broadcast %21 : vector<8x1xf32> to vector<8x8xf32>
      %27 = arith.subf %5, %26 : vector<8x8xf32>
      %28 = math.exp %27 : vector<8x8xf32>
      %cst_16 = arith.constant dense<0.000000e+00> : vector<8xf32>
      %29 = vector.multi_reduction <add>, %28, %cst_16 [1] : vector<8x8xf32> to vector<8xf32>
      %30 = vector.shape_cast %29 : vector<8xf32> to vector<8x1xf32>
      %31 = arith.addf %25, %30 : vector<8x1xf32>
      %c0_17 = arith.constant 0 : index
      %c0_18 = arith.constant 0 : index
      %32 = vector.load %arg6[%c0_17, %c0_18] : memref<8x1xf32, #tpu.memory_space<vmem>>, vector<8x1xf32>
      tpu.vector_store %arg6[%c0_17, %c0_18], %31 {strides = array<i32>} : memref<8x1xf32, #tpu.memory_space<vmem>>, vector<8x1xf32>,
      %c0_19 = arith.constant 0 : index
      %c0_20 = arith.constant 0 : index
      %33 = vector.load %arg5[%c0_19, %c0_20] : memref<8x1xf32, #tpu.memory_space<vmem>>, vector<8x1xf32>
      tpu.vector_store %arg5[%c0_19, %c0_20], %21 {strides = array<i32>} : memref<8x1xf32, #tpu.memory_space<vmem>>, vector<8x1xf32>,
    } else {
    }
    %12 = arith.cmpi eq, %arg1, %arg0 : i32
    %13 = arith.extui %12 : i1 to i32
    %c0_i32_8 = arith.constant 0 : i32
    %14 = arith.cmpi ne, %13, %c0_i32_8 : i32
    scf.if %14 {
      %18 = arith.mulf %3, %4 : vector<8x32xf32>
      %cst_11 = arith.constant dense<0.000000e+00> : vector<8xf32>
      %19 = vector.multi_reduction <add>, %18, %cst_11 [1] : vector<8x32xf32> to vector<8xf32>
      %20 = vector.shape_cast %19 : vector<8xf32> to vector<8x1xf32>
      %c0_12 = arith.constant 0 : index
      %c0_13 = arith.constant 0 : index
      %21 = vector.load %arg7[%c0_12, %c0_13] : memref<8x1xf32, #tpu.memory_space<vmem>>, vector<8x1xf32>
      tpu.vector_store %arg7[%c0_12, %c0_13], %20 {strides = array<i32>} : memref<8x1xf32, #tpu.memory_space<vmem>>, vector<8x1xf32>,
    } else {
    }
    %c0_i32_9 = arith.constant 0 : i32
    %15 = arith.cmpi eq, %arg1, %c0_i32_9 : i32
    %16 = arith.extui %15 : i1 to i32
    %c0_i32_10 = arith.constant 0 : i32
    %17 = arith.cmpi ne, %16, %c0_i32_10 : i32
    scf.if %17 {
      %c0_11 = arith.constant 0 : index
      %c0_12 = arith.constant 0 : index
      %18 = vector.load %arg5[%c0_11, %c0_12] : memref<8x1xf32, #tpu.memory_space<vmem>>, vector<8x1xf32>
      %c0_13 = arith.constant 0 : index
      %c0_14 = arith.constant 0 : index
      %19 = vector.load %arg6[%c0_13, %c0_14] : memref<8x1xf32, #tpu.memory_space<vmem>>, vector<8x1xf32>
      %20 = math.log %19 : vector<8x1xf32>
      %21 = arith.addf %18, %20 : vector<8x1xf32>
      %c0_15 = arith.constant 0 : index
      %c0_16 = arith.constant 0 : index
      %22 = vector.load %arg7[%c0_15, %c0_16] : memref<8x1xf32, #tpu.memory_space<vmem>>, vector<8x1xf32>
      %23 = arith.subf %21, %22 : vector<8x1xf32>
      %24 = tpu.iota {dimensions = array<i32: 0>} : vector<8x1xi32>
      %c8_i32 = arith.constant 8 : i32
      %25 = arith.muli %arg0, %c8_i32 : i32
      %26 = vector.broadcast %25 : i32 to vector<8x1xi32>
      %27 = arith.addi %24, %26 : vector<8x1xi32>
      %c4_i32 = arith.constant 4 : i32
      %28 = vector.broadcast %c4_i32 : i32 to vector<8x1xi32>
      %29 = arith.cmpi slt, %27, %28 : vector<8x1xi32>
      %cst_17 = arith.constant 0.000000e+00 : f32
      %30 = vector.broadcast %cst_17 : f32 to vector<8x1xf32>
      %31 = arith.select %29, %23, %30 : vector<8x1xi1>, vector<8x1xf32>
      %c0_18 = arith.constant 0 : index
      %c0_19 = arith.constant 0 : index
      %32 = vector.load %arg4[%c0_18, %c0_19] : memref<8x1xf32, #tpu.memory_space<vmem>>, vector<8x1xf32>
      tpu.vector_store %arg4[%c0_18, %c0_19], %31 {strides = array<i32>} : memref<8x1xf32, #tpu.memory_space<vmem>>, vector<8x1xf32>,
    } else {
    }
    return
  }
  func.func @transform_0(%arg0: i32, %arg1: i32) -> (i32, i32) {
    %c0_i32 = arith.constant 0 : i32
    %c0_i32_0 = arith.constant 0 : i32
    return %arg0, %c0_i32 : i32, i32
  }
  func.func @transform_1(%arg0: i32, %arg1: i32) -> (i32, i32) {
    %c0_i32 = arith.constant 0 : i32
    %c0_i32_0 = arith.constant 0 : i32
    return %arg1, %c0_i32 : i32, i32
  }
  func.func @transform_2(%arg0: i32, %arg1: i32) -> (i32, i32) {
    %c0_i32 = arith.constant 0 : i32
    %c0_i32_0 = arith.constant 0 : i32
    return %arg0, %c0_i32 : i32, i32
  }
}

</mosaic_0001>

<bundles_post_ra>
// kernel: tpu_custom_call.1
= control target key start
LH: loop header
LB: loop body
LE: loop exit
PB: predicated region body
PF: predicated region fallthrough
CT: control target
= control target key end

     0   :  { %7 = vsyncpa [#allocation6], 0  ;;  %s284_s0 = inlined_call_operand.hbm [shape: f32[8,32], index: 0, kind: input, shape index: {}]   ;;  %s285_s1 = inlined_call_operand.hbm [shape: f32[8,32], index: 1, kind: input, shape index: {}]   ;;  %s286_s2 = inlined_call_operand.vmem [shape: f32[8,1], index: 2, kind: output, shape index: {}]  }
   0x1   :  { %s14_s11 = sshll.u32 %s284_s0, 4  ;;  %s15_s11 = int_to_ptr.hbm [resolvable:$true] %s14_s11 }
   0x2   :  { %8 = vsyncpa [#allocation8], 0  ;;  %s243_s12 = smov [#allocation5]   ;;  %s25_s16 = sshll.u32 %s285_s1, 4  ;;  %s26_s16 = int_to_ptr.hbm [resolvable:$true] %s25_s16 }
   0x3   :  { %s16_s13 = sshll.u32 %s243_s12, 4  ;;  %s244_s17 = smov [#allocation7]   ;;  %s17_s13 = int_to_ptr.vmem [resolvable:$true] %s16_s13 }
   0x4   :  { %19 = dma.hbm_to_vmem [thread:$0]  %s15_s11, 128, %s17_s13, [#allocation6]  }
   0x5   :  { %s27_s18 = sshll.u32 %s244_s17, 4  ;;  %s28_s18 = int_to_ptr.vmem [resolvable:$true] %s27_s18 }
   0x6   :  { %30 = dma.hbm_to_vmem [thread:$0]  %s26_s16, 128, %s28_s18, [#allocation8]  }
   0x7   :  { %239 = dma.done.wait [#allocation6], 128  }
   0x8   :  { %240 = vsyncadd [#allocation6], 4294967168 }
   0x9   :  { %241 = dma.done.wait [#allocation8], 128  }
   0xa   :  { %242 = vsyncadd [#allocation8], 4294967168  ;;  %vm49_vm0 = vcmask 261120   ;;  %v47_v0 = vld [vmem:[#allocation5] sm:$0xff]  ;;  %v48_v1 = vld [vmem:[#allocation7] sm:$0xff]  ;;  %vm43_vm1 = vcmask 7168   ;;  %v79_v4 = vlaneseq }
   0xb   :  { %177 = vmatpush.xpose.msk.msra.mxu0 %vm49_vm0, %v48_v1  ;;  %v146_v2 = vmul.f32 %v48_v1, %v47_v0  ;;  %v245_v3 = vmov -inf   ;;  %vm87_vm3 = vcmask 64512   ;;  %v246_v9 = vmov 0  }
   0xc   :  { %44 = vst.msk [vmem:[#allocation2] sm:$0xff] %vm43_vm1, %v245_v3  ;;  %v80_v5 = vand.u32 127, %v79_v4  ;;  %184 = vset.pattern.permute.xlu0 %v246_v9  ;;  %v247_v10 = vmov 0.0   ;;  %v163_v30 = vshrl.u32 %v79_v4, 7 }
   0xd   :  { %45 = vst.msk [vmem:[#allocation3] sm:$0xff] %vm43_vm1, %v247_v10  ;;  %v147_v20 = vsel %vm49_vm0, %v146_v2, 0.0 }
   0xe   :  { %178 = vmatmul.msk.f32.vlgmr.msra.gmra.mxu0 %vm49_vm0, %v47_v0  ;;  %vm84_vm2 = vcmp.lt.s32.totalorder %v80_v5, 4  ;;  %46 = vst.msk [vmem:[#allocation4] sm:$0xff] %vm43_vm1, %v247_v10  ;;  %vm167_vm4 = vcmp.lt.s32.totalorder %v163_v30, 4 }
  0x13   :  { %v86_v11 = vld [vmem:[#allocation2] sm:$0xff] }
  0x14   :  { %v95_v23 = vld [vmem:[#allocation3] sm:$0xff] }
  0x8b   :  { %v73_v6 = vpop.f32.mrf.mxu0 }
  0x8c   :  { %v85_v7 = vsel %vm84_vm2, %v73_v6, -inf }
  0x8d   :  { %v88_v8 = vsel %vm87_vm3, %v85_v7, -inf }
  0x8e   :  { %89 = vmax.xlane.f32.xlu0 %v88_v8 }
 0x101   :  { %v90_v12 = vpop.xlane.xlu0 %89 }
 0x102   :  { %v91_v13 = vmax.f32 %v86_v11, %v90_v12 }
 0x104   :  { %v92_v14 = vsub.f32 %v86_v11, %v91_v13  ;;  %111 = vst.msk [vmem:[#allocation2] sm:$0xff] %vm43_vm1, %v91_v13  ;;  %99 = vperm.xlu0 %184, %v91_v13  }
 0x106   :  { %v93_v21 = vmul.f32 1.442695, %v92_v14 }
 0x10b   :  { %v155_v32 = vld [vmem:[#allocation2] sm:$0xff] }
 0x176   :  { %v100_v15 = vpop.permute.xlu0 %99 }
 0x177   :  { %v102_v16 = vsub.f32 %v85_v7, %v100_v15 }
 0x179   :  { %v103_v17 = vmul.f32 1.442695, %v102_v16 }
 0x17b   :  { %185 = vpow2.f32 %v103_v17 }
 0x17c   :  { %187 = vpow2.f32 %v93_v21 }
 0x181   :  { %v186_v18 = vpop.eup %185 }
 0x182   :  { %v105_v19 = vsel %vm87_vm3, %v186_v18, 0.0  ;;  %v188_v22 = vpop.eup %187 }
 0x183   :  { %106 = vadd.xlane.f32.xlu1 %v105_v19  ;;  %v96_v24 = vmul.f32 %v188_v22, %v95_v23 }
 0x18b   :  { %148 = vadd.xlane.f32.xlu1 %v147_v20 }
 0x1f6   :  { %v107_v25 = vpop.xlane.xlu1 %106 }
 0x1f7   :  { %v108_v26 = vadd.f32 %v107_v25, %v96_v24 }
 0x1f9   :  { %110 = vst.msk [vmem:[#allocation3] sm:$0xff] %vm43_vm1, %v108_v26 }
 0x1fe   :  { %v149_v27 = vpop.xlane.xlu1 %148 }
 0x1ff   :  { %151 = vst.msk [vmem:[#allocation4] sm:$0xff] %vm43_vm1, %v149_v27 }
 0x200   :  { %v156_v28 = vld [vmem:[#allocation3] sm:$0xff] }
 0x201   :  { %189 = vlog2.f32 %v156_v28 }
 0x206   :  { %v160_v33 = vld [vmem:[#allocation4] sm:$0xff] }
 0x207   :  { %v190_v29 = vpop.eup %189 }
 0x208   :  { %v158_v31 = vmul.f32 0.6931472, %v190_v29 }
 0x20a   :  { %v159_v34 = vadd.f32 %v158_v31, %v155_v32 }
 0x20c   :  { %v161_v35 = vsub.f32 %v159_v34, %v160_v33 }
 0x20e   :  { %v168_v36 = vsel %vm167_vm4, %v161_v35, 0.0 }
 0x20f   :  { %170 = vst.msk [vmem:[%s286_s2] sm:$0xff] %vm43_vm1, %v168_v36 }
 0x210   :  { %175 = vsyncpa [#allocation6], 1 }
 0x211   :  { %176 = vsyncpa [#allocation8], 1 }

</bundles_post_ra>
